<compile_context>
chip_gen: v5e
topology: v5e:2x2
jax: 0.10.0
libtpu: 0.0.40
codegen_flags: <defaults>
</compile_context>

<pallas_src>
import functools

import numpy as np
import jax
import jax.numpy as jnp
from jax.experimental import pallas as pl
from jax.experimental.pallas import tpu as pltpu


def _bottleneck_kernel(H, W,
                       x_ref, masks_ref,
                       bn1s_ref, bn1b_ref, w1_ref, c1_ref,
                       w2_ref, c2_ref, w3_ref, b3_ref,
                       out_ref):
    HW = H * W
    mm_dtype = w1_ref.dtype

    x = x_ref[...].astype(jnp.float32)                # (Cin, HW), channels on sublanes
    # bn1 + relu (eval-mode BN folded to per-channel scale/bias)
    h0 = jnp.maximum(x * bn1s_ref[...] + bn1b_ref[...], 0.0)
    # conv1 (1x1) with bn2 + conv1-bias folded in, + relu
    h1 = jnp.dot(w1_ref[...], h0.astype(mm_dtype),
                 preferred_element_type=jnp.float32) + c1_ref[...]
    h1 = jnp.maximum(h1, 0.0)                         # (Pp, HW); padded rows stay 0

    # conv2 (3x3, stride 1, pad 1) as a single im2col matmul.  Each non-center
    # tap is a cyclic lane rotation of h1 along the flattened H*W axis
    # (pltpu.roll -> XLU); wrapped / out-of-image positions are zeroed by the
    # precomputed 0/1 halo-mask table.  Mask multiply stays f32 (v5e has no
    # bf16 VALU); the tap is cast to bf16 afterwards so the big (9*Pp, HW)
    # patch block is half-size and feeds the MXU directly.
    taps = []
    tidx = 0
    for kh in range(3):
        for kw in range(3):
            dh, dw = kh - 1, kw - 1
            off = dh * W + dw
            if off == 0:
                taps.append(h1.astype(mm_dtype))      # center tap, always valid
                continue
            rolled = pltpu.roll(h1, shift=(-off) % HW, axis=1)  # [:, p] = h1[:, (p+off) % HW]
            taps.append((rolled * masks_ref[tidx]).astype(mm_dtype))
            tidx += 1
    patches = jnp.concatenate(taps, axis=0)           # (9*Pp, HW) bf16, tile-aligned
    h2 = jnp.dot(w2_ref[...], patches,
                 preferred_element_type=jnp.float32) + c2_ref[...]
    h2 = jnp.maximum(h2, 0.0)                         # (P, HW)

    # conv3 (1x1) + residual (downsample is None => residual = x)
    out = jnp.dot(w3_ref[...], h2.astype(mm_dtype),
                  preferred_element_type=jnp.float32) + b3_ref[...] + x
    out_ref[...] = out.astype(out_ref.dtype)          # lane-dense, unmasked store


def bottleneck2d(x_nchw, fp):
    """x_nchw: (N, Cin, H, W) f32, PyTorch layout. fp: folded params (fold_params)."""
    N, Cin, H, W = x_nchw.shape
    HW = H * W
    Cout = fp["w3f"].shape[0]
    assert Cout == Cin, "downsample=None requires inplanes == 2*planes"

    # Free reshape (no transpose): channels stay on sublanes, H*W goes on lanes.
    x = x_nchw.reshape(N, Cin, HW)

    # Precomputed halo masks for the 8 non-center taps of the 3x3 conv
    # (tap order: (kh, kw) row-major, center skipped).
    r = np.arange(H).reshape(H, 1)
    c = np.arange(W).reshape(1, W)
    mask_rows = []
    for kh in range(3):
        for kw in range(3):
            dh, dw = kh - 1, kw - 1
            if dh == 0 and dw == 0:
                continue
            valid = ((r + dh >= 0) & (r + dh < H) & (c + dw >= 0) & (c + dw < W))
            mask_rows.append(valid.astype(np.float32).reshape(-1))
    tap_masks = jnp.asarray(np.stack(mask_rows, axis=0))        # (8, HW) f32

    def const_spec(a):   # full-array block, constant index map => DMA'd once, kept resident
        return pl.BlockSpec(a.shape, lambda i: (0, 0))

    kernel = functools.partial(_bottleneck_kernel, H, W)

    out = pl.pallas_call(
        kernel,
        out_shape=jax.ShapeDtypeStruct((N, Cout, HW), jnp.float32),
        grid=(N,),                                     # one image per step (no Python unroll)
        in_specs=[
            pl.BlockSpec((None, Cin, HW), lambda i: (i, 0, 0)),   # batch dim squeezed
            const_spec(tap_masks),
            const_spec(fp["bn1_s"]), const_spec(fp["bn1_b"]),
            const_spec(fp["w1f"]), const_spec(fp["c1"]),
            const_spec(fp["w2f"]), const_spec(fp["c2"]),
            const_spec(fp["w3f"]), const_spec(fp["b3"]),
        ],
        out_specs=pl.BlockSpec((None, Cout, HW), lambda i: (i, 0, 0)),
        compiler_params=pltpu.CompilerParams(
            dimension_semantics=("parallel",)),        # batch steps independent (v7x: 2 TCs)
    )(x, tap_masks,
      fp["bn1_s"], fp["bn1_b"], fp["w1f"], fp["c1"],
      fp["w2f"], fp["c2"], fp["w3f"], fp["b3"])

    return out.reshape(N, Cout, H, W)                  # free reshape back to NCHW


def make_params(key, inplanes, planes):
    """Synthetic Bottleneck2D parameters (PyTorch layouts); eval-mode BN is
    represented as per-channel scale/bias (running stats folded)."""
    ks = jax.random.split(key, 18)
    eps = 1e-5

    def bn(kg, kb, km, kv, ch):
        gamma = jax.random.normal(kg, (ch,), jnp.float32) * 0.1 + 1.0
        beta = jax.random.normal(kb, (ch,), jnp.float32) * 0.1
        mean = jax.random.normal(km, (ch,), jnp.float32) * 0.1
        var = jax.random.uniform(kv, (ch,), jnp.float32, minval=0.5, maxval=1.5)
        scale = gamma / jnp.sqrt(var + eps)
        return scale, beta - mean * scale

    bn1_s, bn1_b = bn(ks[0], ks[1], ks[2], ks[3], inplanes)
    bn2_s, bn2_b = bn(ks[4], ks[5], ks[6], ks[7], planes)
    bn3_s, bn3_b = bn(ks[8], ks[9], ks[10], ks[11], planes)

    w1 = jax.random.normal(ks[12], (planes, inplanes), jnp.float32) * 0.1       # conv1 (O, I)
    b1 = jax.random.normal(ks[13], (planes,), jnp.float32) * 0.1
    w2 = jax.random.normal(ks[14], (planes, planes, 3, 3), jnp.float32) * 0.1   # conv2 OIHW
    b2 = jax.random.normal(ks[15], (planes,), jnp.float32) * 0.1
    w3 = jax.random.normal(ks[16], (planes * 2, planes), jnp.float32) * 0.1     # conv3 (O, I)
    b3 = jax.random.normal(ks[17], (planes * 2,), jnp.float32) * 0.1

    return dict(bn1_s=bn1_s, bn1_b=bn1_b, bn2_s=bn2_s, bn2_b=bn2_b,
                bn3_s=bn3_s, bn3_b=bn3_b, w1=w1, b1=b1, w2=w2, b2=b2,
                w3=w3, b3=b3)


def fold_params(p, mm_dtype=jnp.bfloat16):
    """Fold BN2/BN3 + conv1/conv2 biases into the conv weights and lay them out
    for the channels-on-sublane kernel.  conv1 output channels are zero-padded
    to the matmul-dtype sublane tile (16 rows for bf16, 8 for f32) so the
    in-kernel bf16 im2col concat is tile-aligned."""
    P, Cin = p["w1"].shape
    Cout = p["w3"].shape[0]
    sublane = 16 if jnp.dtype(mm_dtype).itemsize == 2 else 8
    Pp = -(-P // sublane) * sublane

    # conv1 (1x1): bn2 scale folded into rows, conv1 bias folded into the bias.
    w1f = jnp.zeros((Pp, Cin), jnp.float32).at[:P].set(p["bn2_s"][:, None] * p["w1"])
    c1 = jnp.zeros((Pp, 1), jnp.float32).at[:P, 0].set(p["bn2_s"] * p["b1"] + p["bn2_b"])

    # conv2 (3x3): OIHW -> im2col weights (P, 9*Pp), bn3 + conv2 bias folded in.
    w2t = jnp.transpose(p["w2"], (2, 3, 1, 0))                       # (kh, kw, I, O)
    w2p = jnp.zeros((3, 3, Pp, P), jnp.float32).at[:, :, :P, :].set(w2t)
    w2f = (p["bn3_s"][None, :] * w2p.reshape(9 * Pp, P)).T           # (O, 9*Pp)
    c2 = (p["bn3_s"] * p["b2"] + p["bn3_b"]).reshape(P, 1)

    return dict(
        bn1_s=p["bn1_s"].reshape(Cin, 1), bn1_b=p["bn1_b"].reshape(Cin, 1),
        w1f=w1f.astype(mm_dtype), c1=c1,
        w2f=w2f.astype(mm_dtype), c2=c2,
        w3f=p["w3"].astype(mm_dtype), b3=p["b3"].reshape(Cout, 1),
    )


def reference_nchw(x, p):
    """Pure-JAX NCHW reference mirroring the PyTorch module (eval-mode BN)."""
    def bn(h, s, b):
        return h * s[None, :, None, None] + b[None, :, None, None]
    h = jnp.maximum(bn(x, p["bn1_s"], p["bn1_b"]), 0.0)
    h = jnp.einsum("nchw,oc->nohw", h, p["w1"]) + p["b1"][None, :, None, None]
    h = jnp.maximum(bn(h, p["bn2_s"], p["bn2_b"]), 0.0)
    h = jax.lax.conv_general_dilated(
        h, p["w2"], window_strides=(1, 1), padding="SAME",
        dimension_numbers=("NCHW", "OIHW", "NCHW")) + p["b2"][None, :, None, None]
    h = jnp.maximum(bn(h, p["bn3_s"], p["bn3_b"]), 0.0)
    h = jnp.einsum("nchw,oc->nohw", h, p["w3"]) + p["b3"][None, :, None, None]
    return h + x


if __name__ == "__main__":
    N, inplanes, planes, H, W = 2, 8, 4, 16, 16   # inplanes == 2*planes (downsample=None)
    key = jax.random.PRNGKey(0)
    kx, kp = jax.random.split(key)
    x = jax.random.normal(kx, (N, inplanes, H, W), jnp.float32)   # NCHW, like PyTorch
    params = make_params(kp, inplanes, planes)
    fp = fold_params(params)                                       # bf16 MXU weights

    out = jax.block_until_ready(bottleneck2d(x, fp))
    ref = reference_nchw(x, params)

    assert out.shape == (N, inplanes, H, W)
    max_err = float(jnp.max(jnp.abs(out - ref)))
    # bf16 MXU inputs with f32 accumulation => small deviation vs the f32 reference.
    assert jnp.allclose(out, ref, atol=2e-2, rtol=2e-2), \
        f"mismatch vs reference (max |err| = {max_err})"
    print("KERNEL_OK")
</pallas_src>

<mosaic_0001>
module attributes {stable_mosaic.version = 11 : i64} {
  func.func @_bottleneck_kernel(%arg0: i32, %arg1: memref<1x8x256xf32, #tpu.memory_space<vmem>>, %arg2: memref<8x256xf32, #tpu.memory_space<vmem>>, %arg3: memref<8x1xf32, #tpu.memory_space<vmem>>, %arg4: memref<8x1xf32, #tpu.memory_space<vmem>>, %arg5: memref<16x8xbf16, #tpu.memory_space<vmem>>, %arg6: memref<16x1xf32, #tpu.memory_space<vmem>>, %arg7: memref<4x144xbf16, #tpu.memory_space<vmem>>, %arg8: memref<4x1xf32, #tpu.memory_space<vmem>>, %arg9: memref<8x4xbf16, #tpu.memory_space<vmem>>, %arg10: memref<8x1xf32, #tpu.memory_space<vmem>>, %arg11: memref<1x8x256xf32, #tpu.memory_space<vmem>>) attributes {dimension_semantics = [#tpu.dimension_semantics<parallel>], iteration_bounds = array<i64: 2>, scalar_prefetch = 0 : i64, scratch_operands = 0 : i64, tpu.core_type = #tpu.core_type<tc>, window_params = [{transform_indices = @transform_0, window_bounds = array<i64: 1, 8, 256>}, {pipeline_mode = #tpu.pipeline_mode<synchronous>, transform_indices = @transform_1, window_bounds = array<i64: 8, 256>}, {pipeline_mode = #tpu.pipeline_mode<synchronous>, transform_indices = @transform_2, window_bounds = array<i64: 8, 1>}, {pipeline_mode = #tpu.pipeline_mode<synchronous>, transform_indices = @transform_3, window_bounds = array<i64: 8, 1>}, {pipeline_mode = #tpu.pipeline_mode<synchronous>, transform_indices = @transform_4, window_bounds = array<i64: 16, 8>}, {pipeline_mode = #tpu.pipeline_mode<synchronous>, transform_indices = @transform_5, window_bounds = array<i64: 16, 1>}, {pipeline_mode = #tpu.pipeline_mode<synchronous>, transform_indices = @transform_6, window_bounds = array<i64: 4, 144>}, {pipeline_mode = #tpu.pipeline_mode<synchronous>, transform_indices = @transform_7, window_bounds = array<i64: 4, 1>}, {pipeline_mode = #tpu.pipeline_mode<synchronous>, transform_indices = @transform_8, window_bounds = array<i64: 8, 4>}, {pipeline_mode = #tpu.pipeline_mode<synchronous>, transform_indices = @transform_9, window_bounds = array<i64: 8, 1>}, {transform_indices = @transform_10, window_bounds = array<i64: 1, 8, 256>}]} {
    %c0 = arith.constant 0 : index
    %c0_0 = arith.constant 0 : index
    %c0_1 = arith.constant 0 : index
    %0 = vector.load %arg1[%c0, %c0_0, %c0_1] : memref<1x8x256xf32, #tpu.memory_space<vmem>>, vector<1x8x256xf32>
    %1 = vector.shape_cast %0 : vector<1x8x256xf32> to vector<8x256xf32>
    %c0_2 = arith.constant 0 : index
    %c0_3 = arith.constant 0 : index
    %2 = vector.load %arg3[%c0_2, %c0_3] : memref<8x1xf32, #tpu.memory_space<vmem>>, vector<8x1xf32>
    %3 = vector.broadcast %2 : vector<8x1xf32> to vector<8x256xf32>
    %4 = arith.mulf %1, %3 : vector<8x256xf32>
    %c0_4 = arith.constant 0 : index
    %c0_5 = arith.constant 0 : index
    %5 = vector.load %arg4[%c0_4, %c0_5] : memref<8x1xf32, #tpu.memory_space<vmem>>, vector<8x1xf32>
    %6 = vector.broadcast %5 : vector<8x1xf32> to vector<8x256xf32>
    %7 = arith.addf %4, %6 : vector<8x256xf32>
    %cst = arith.constant 0.000000e+00 : f32
    %8 = vector.broadcast %cst : f32 to vector<8x256xf32>
    %9 = arith.maximumf %7, %8 : vector<8x256xf32>
    %c0_6 = arith.constant 0 : index
    %c0_7 = arith.constant 0 : index
    %10 = vector.load %arg5[%c0_6, %c0_7] : memref<16x8xbf16, #tpu.memory_space<vmem>>, vector<16x8xbf16>
    %11 = arith.truncf %9 : vector<8x256xf32> to vector<8x256xbf16>
    %cst_8 = arith.constant dense<0.000000e+00> : vector<16x256xf32>
    %12 = tpu.matmul %10, %11, %cst_8 {dimension_numbers = #tpu.dot_dimension_numbers<[1], [0], [0], [1], [0, 0, 1, 1], [], []>} : vector<16x8xbf16>, vector<8x256xbf16>, vector<16x256xf32> -> vector<16x256xf32>
    %c0_9 = arith.constant 0 : index
    %c0_10 = arith.constant 0 : index
    %13 = vector.load %arg6[%c0_9, %c0_10] : memref<16x1xf32, #tpu.memory_space<vmem>>, vector<16x1xf32>
    %14 = vector.broadcast %13 : vector<16x1xf32> to vector<16x256xf32>
    %15 = arith.addf %12, %14 : vector<16x256xf32>
    %cst_11 = arith.constant 0.000000e+00 : f32
    %16 = vector.broadcast %cst_11 : f32 to vector<16x256xf32>
    %17 = arith.maximumf %15, %16 : vector<16x256xf32>
    %c17_i32 = arith.constant 17 : i32
    %18 = tpu.dynamic_rotate %17 by %c17_i32 dim 1 : vector<16x256xf32>, i32 -> vector<16x256xf32>
    %c0_12 = arith.constant 0 : index
    %c0_13 = arith.constant 0 : index
    %19 = vector.load %arg2[%c0_12, %c0_13] : memref<8x256xf32, #tpu.memory_space<vmem>>, vector<1x256xf32>
    %20 = vector.shape_cast %19 : vector<1x256xf32> to vector<256xf32>
    %21 = vector.shape_cast %20 : vector<256xf32> to vector<1x256xf32>
    %22 = vector.broadcast %21 : vector<1x256xf32> to vector<16x256xf32>
    %23 = arith.mulf %18, %22 : vector<16x256xf32>
    %24 = arith.truncf %23 : vector<16x256xf32> to vector<16x256xbf16>
    %c16_i32 = arith.constant 16 : i32
    %25 = tpu.dynamic_rotate %17 by %c16_i32 dim 1 : vector<16x256xf32>, i32 -> vector<16x256xf32>
    %c1 = arith.constant 1 : index
    %c0_14 = arith.constant 0 : index
    %26 = vector.load %arg2[%c1, %c0_14] : memref<8x256xf32, #tpu.memory_space<vmem>>, vector<1x256xf32>
    %27 = vector.shape_cast %26 : vector<1x256xf32> to vector<256xf32>
    %28 = vector.shape_cast %27 : vector<256xf32> to vector<1x256xf32>
    %29 = vector.broadcast %28 : vector<1x256xf32> to vector<16x256xf32>
    %30 = arith.mulf %25, %29 : vector<16x256xf32>
    %31 = arith.truncf %30 : vector<16x256xf32> to vector<16x256xbf16>
    %c15_i32 = arith.constant 15 : i32
    %32 = tpu.dynamic_rotate %17 by %c15_i32 dim 1 : vector<16x256xf32>, i32 -> vector<16x256xf32>
    %c2 = arith.constant 2 : index
    %c0_15 = arith.constant 0 : index
    %33 = vector.load %arg2[%c2, %c0_15] : memref<8x256xf32, #tpu.memory_space<vmem>>, vector<1x256xf32>
    %34 = vector.shape_cast %33 : vector<1x256xf32> to vector<256xf32>
    %35 = vector.shape_cast %34 : vector<256xf32> to vector<1x256xf32>
    %36 = vector.broadcast %35 : vector<1x256xf32> to vector<16x256xf32>
    %37 = arith.mulf %32, %36 : vector<16x256xf32>
    %38 = arith.truncf %37 : vector<16x256xf32> to vector<16x256xbf16>
    %c1_i32 = arith.constant 1 : i32
    %39 = tpu.dynamic_rotate %17 by %c1_i32 dim 1 : vector<16x256xf32>, i32 -> vector<16x256xf32>
    %c3 = arith.constant 3 : index
    %c0_16 = arith.constant 0 : index
    %40 = vector.load %arg2[%c3, %c0_16] : memref<8x256xf32, #tpu.memory_space<vmem>>, vector<1x256xf32>
    %41 = vector.shape_cast %40 : vector<1x256xf32> to vector<256xf32>
    %42 = vector.shape_cast %41 : vector<256xf32> to vector<1x256xf32>
    %43 = vector.broadcast %42 : vector<1x256xf32> to vector<16x256xf32>
    %44 = arith.mulf %39, %43 : vector<16x256xf32>
    %45 = arith.truncf %44 : vector<16x256xf32> to vector<16x256xbf16>
    %46 = arith.truncf %17 : vector<16x256xf32> to vector<16x256xbf16>
    %c255_i32 = arith.constant 255 : i32
    %47 = tpu.dynamic_rotate %17 by %c255_i32 dim 1 : vector<16x256xf32>, i32 -> vector<16x256xf32>
    %c4 = arith.constant 4 : index
    %c0_17 = arith.constant 0 : index
    %48 = vector.load %arg2[%c4, %c0_17] : memref<8x256xf32, #tpu.memory_space<vmem>>, vector<1x256xf32>
    %49 = vector.shape_cast %48 : vector<1x256xf32> to vector<256xf32>
    %50 = vector.shape_cast %49 : vector<256xf32> to vector<1x256xf32>
    %51 = vector.broadcast %50 : vector<1x256xf32> to vector<16x256xf32>
    %52 = arith.mulf %47, %51 : vector<16x256xf32>
    %53 = arith.truncf %52 : vector<16x256xf32> to vector<16x256xbf16>
    %c241_i32 = arith.constant 241 : i32
    %54 = tpu.dynamic_rotate %17 by %c241_i32 dim 1 : vector<16x256xf32>, i32 -> vector<16x256xf32>
    %c5 = arith.constant 5 : index
    %c0_18 = arith.constant 0 : index
    %55 = vector.load %arg2[%c5, %c0_18] : memref<8x256xf32, #tpu.memory_space<vmem>>, vector<1x256xf32>
    %56 = vector.shape_cast %55 : vector<1x256xf32> to vector<256xf32>
    %57 = vector.shape_cast %56 : vector<256xf32> to vector<1x256xf32>
    %58 = vector.broadcast %57 : vector<1x256xf32> to vector<16x256xf32>
    %59 = arith.mulf %54, %58 : vector<16x256xf32>
    %60 = arith.truncf %59 : vector<16x256xf32> to vector<16x256xbf16>
    %c240_i32 = arith.constant 240 : i32
    %61 = tpu.dynamic_rotate %17 by %c240_i32 dim 1 : vector<16x256xf32>, i32 -> vector<16x256xf32>
    %c6 = arith.constant 6 : index
    %c0_19 = arith.constant 0 : index
    %62 = vector.load %arg2[%c6, %c0_19] : memref<8x256xf32, #tpu.memory_space<vmem>>, vector<1x256xf32>
    %63 = vector.shape_cast %62 : vector<1x256xf32> to vector<256xf32>
    %64 = vector.shape_cast %63 : vector<256xf32> to vector<1x256xf32>
    %65 = vector.broadcast %64 : vector<1x256xf32> to vector<16x256xf32>
    %66 = arith.mulf %61, %65 : vector<16x256xf32>
    %67 = arith.truncf %66 : vector<16x256xf32> to vector<16x256xbf16>
    %c239_i32 = arith.constant 239 : i32
    %68 = tpu.dynamic_rotate %17 by %c239_i32 dim 1 : vector<16x256xf32>, i32 -> vector<16x256xf32>
    %c7 = arith.constant 7 : index
    %c0_20 = arith.constant 0 : index
    %69 = vector.load %arg2[%c7, %c0_20] : memref<8x256xf32, #tpu.memory_space<vmem>>, vector<1x256xf32>
    %70 = vector.shape_cast %69 : vector<1x256xf32> to vector<256xf32>
    %71 = vector.shape_cast %70 : vector<256xf32> to vector<1x256xf32>
    %72 = vector.broadcast %71 : vector<1x256xf32> to vector<16x256xf32>
    %73 = arith.mulf %68, %72 : vector<16x256xf32>
    %74 = arith.truncf %73 : vector<16x256xf32> to vector<16x256xbf16>
    %75 = tpu.concatenate %24, %31, %38, %45, %46, %53, %60, %67, %74 in 0 : vector<16x256xbf16>, vector<16x256xbf16>, vector<16x256xbf16>, vector<16x256xbf16>, vector<16x256xbf16>, vector<16x256xbf16>, vector<16x256xbf16>, vector<16x256xbf16>, vector<16x256xbf16> -> vector<144x256xbf16>
    %c0_21 = arith.constant 0 : index
    %c0_22 = arith.constant 0 : index
    %76 = vector.load %arg7[%c0_21, %c0_22] : memref<4x144xbf16, #tpu.memory_space<vmem>>, vector<4x144xbf16>
    %cst_23 = arith.constant dense<0.000000e+00> : vector<4x256xf32>
    %77 = tpu.matmul %76, %75, %cst_23 {dimension_numbers = #tpu.dot_dimension_numbers<[1], [0], [0], [1], [0, 0, 1, 1], [], []>} : vector<4x144xbf16>, vector<144x256xbf16>, vector<4x256xf32> -> vector<4x256xf32>
    %c0_24 = arith.constant 0 : index
    %c0_25 = arith.constant 0 : index
    %78 = vector.load %arg8[%c0_24, %c0_25] : memref<4x1xf32, #tpu.memory_space<vmem>>, vector<4x1xf32>
    %79 = vector.broadcast %78 : vector<4x1xf32> to vector<4x256xf32>
    %80 = arith.addf %77, %79 : vector<4x256xf32>
    %cst_26 = arith.constant 0.000000e+00 : f32
    %81 = vector.broadcast %cst_26 : f32 to vector<4x256xf32>
    %82 = arith.maximumf %80, %81 : vector<4x256xf32>
    %c0_27 = arith.constant 0 : index
    %c0_28 = arith.constant 0 : index
    %83 = vector.load %arg9[%c0_27, %c0_28] : memref<8x4xbf16, #tpu.memory_space<vmem>>, vector<8x4xbf16>
    %84 = arith.truncf %82 : vector<4x256xf32> to vector<4x256xbf16>
    %cst_29 = arith.constant dense<0.000000e+00> : vector<8x256xf32>
    %85 = tpu.matmul %83, %84, %cst_29 {dimension_numbers = #tpu.dot_dimension_numbers<[1], [0], [0], [1], [0, 0, 1, 1], [], []>} : vector<8x4xbf16>, vector<4x256xbf16>, vector<8x256xf32> -> vector<8x256xf32>
    %c0_30 = arith.constant 0 : index
    %c0_31 = arith.constant 0 : index
    %86 = vector.load %arg10[%c0_30, %c0_31] : memref<8x1xf32, #tpu.memory_space<vmem>>, vector<8x1xf32>
    %87 = vector.broadcast %86 : vector<8x1xf32> to vector<8x256xf32>
    %88 = arith.addf %85, %87 : vector<8x256xf32>
    %89 = arith.addf %88, %1 : vector<8x256xf32>
    %c0_32 = arith.constant 0 : index
    %c0_33 = arith.constant 0 : index
    %c0_34 = arith.constant 0 : index
    %90 = vector.load %arg11[%c0_32, %c0_33, %c0_34] : memref<1x8x256xf32, #tpu.memory_space<vmem>>, vector<1x8x256xf32>
    %91 = vector.shape_cast %90 : vector<1x8x256xf32> to vector<8x256xf32>
    %92 = vector.shape_cast %89 : vector<8x256xf32> to vector<1x8x256xf32>
    tpu.vector_store %arg11[%c0_32, %c0_33, %c0_34], %92 {strides = array<i32>} : memref<1x8x256xf32, #tpu.memory_space<vmem>>, vector<1x8x256xf32>,
    return
  }
  func.func @transform_0(%arg0: i32) -> (i32, i32, i32) {
    %c0_i32 = arith.constant 0 : i32
    %c0_i32_0 = arith.constant 0 : i32
    %c0_i32_1 = arith.constant 0 : i32
    return %arg0, %c0_i32, %c0_i32_0 : i32, i32, i32
  }
  func.func @transform_1(%arg0: i32) -> (i32, i32) {
    %c0_i32 = arith.constant 0 : i32
    %c0_i32_0 = arith.constant 0 : i32
    %c0_i32_1 = arith.constant 0 : i32
    return %c0_i32, %c0_i32_0 : i32, i32
  }
  func.func @transform_2(%arg0: i32) -> (i32, i32) {
    %c0_i32 = arith.constant 0 : i32
    %c0_i32_0 = arith.constant 0 : i32
    %c0_i32_1 = arith.constant 0 : i32
    return %c0_i32, %c0_i32_0 : i32, i32
  }
  func.func @transform_3(%arg0: i32) -> (i32, i32) {
    %c0_i32 = arith.constant 0 : i32
    %c0_i32_0 = arith.constant 0 : i32
    %c0_i32_1 = arith.constant 0 : i32
    return %c0_i32, %c0_i32_0 : i32, i32
  }
  func.func @transform_4(%arg0: i32) -> (i32, i32) {
    %c0_i32 = arith.constant 0 : i32
    %c0_i32_0 = arith.constant 0 : i32
    %c0_i32_1 = arith.constant 0 : i32
    return %c0_i32, %c0_i32_0 : i32, i32
  }
  func.func @transform_5(%arg0: i32) -> (i32, i32) {
    %c0_i32 = arith.constant 0 : i32
    %c0_i32_0 = arith.constant 0 : i32
    %c0_i32_1 = arith.constant 0 : i32
    return %c0_i32, %c0_i32_0 : i32, i32
  }
  func.func @transform_6(%arg0: i32) -> (i32, i32) {
    %c0_i32 = arith.constant 0 : i32
    %c0_i32_0 = arith.constant 0 : i32
    %c0_i32_1 = arith.constant 0 : i32
    return %c0_i32, %c0_i32_0 : i32, i32
  }
  func.func @transform_7(%arg0: i32) -> (i32, i32) {
    %c0_i32 = arith.constant 0 : i32
    %c0_i32_0 = arith.constant 0 : i32
    %c0_i32_1 = arith.constant 0 : i32
    return %c0_i32, %c0_i32_0 : i32, i32
  }
  func.func @transform_8(%arg0: i32) -> (i32, i32) {
    %c0_i32 = arith.constant 0 : i32
    %c0_i32_0 = arith.constant 0 : i32
    %c0_i32_1 = arith.constant 0 : i32
    return %c0_i32, %c0_i32_0 : i32, i32
  }
  func.func @transform_9(%arg0: i32) -> (i32, i32) {
    %c0_i32 = arith.constant 0 : i32
    %c0_i32_0 = arith.constant 0 : i32
    %c0_i32_1 = arith.constant 0 : i32
    return %c0_i32, %c0_i32_0 : i32, i32
  }
  func.func @transform_10(%arg0: i32) -> (i32, i32, i32) {
    %c0_i32 = arith.constant 0 : i32
    %c0_i32_0 = arith.constant 0 : i32
    %c0_i32_1 = arith.constant 0 : i32
    return %arg0, %c0_i32, %c0_i32_0 : i32, i32, i32
  }
}

</mosaic_0001>

<bundles_post_ra>
// kernel: tpu_custom_call.1
= control target key start
LH: loop header
LB: loop body
LE: loop exit
PB: predicated region body
PF: predicated region fallthrough
CT: control target
= control target key end

     0   :  { %15 = vsyncpa [#allocation3], 0  ;;  %s1606_s0 = inlined_call_operand.hbm [shape: f32[2,8,256], index: 0, kind: input, shape index: {}]   ;;  %s1607_s1 = inlined_call_operand.vmem [shape: f32[8,256], index: 1, kind: input, shape index: {}]   ;;  %s1608_s2 = inlined_call_operand.vmem [shape: f32[8,1], index: 2, kind: input, shape index: {}]   ;;  %s1609_s3 = inlined_call_operand.vmem [shape: f32[8,1], index: 3, kind: input, shape index: {}]   ;;  %s1610_s4 = inlined_call_operand.vmem [shape: bf16[16,8], index: 4, kind: input, shape index: {}]   ;;  %s1611_s5 = inlined_call_operand.vmem [shape: f32[16,1], index: 5, kind: input, shape index: {}]   ;;  %s1612_s6 = inlined_call_operand.vmem [shape: bf16[4,144], index: 6, kind: input, shape index: {}]   ;;  %s1613_s7 = inlined_call_operand.vmem [shape: f32[4,1], index: 7, kind: input, shape index: {}]   ;;  %s1614_s8 = inlined_call_operand.vmem [shape: bf16[8,4], index: 8, kind: input, shape index: {}]   ;;  %s1615_s9 = inlined_call_operand.vmem [shape: f32[8,1], index: 9, kind: input, shape index: {}]   ;;  %s1616_s10 = inlined_call_operand.hbm [shape: f32[2,8,256], index: 10, kind: output, shape index: {}]  }
   0x1   :  { %17 = vsyncpa [#allocation3 + $0x1], 0 }
   0x2   :  { %18 = vsyncpa [#allocation4], 0 }
   0x3   :  { %20 = vsyncpa [#allocation4 + $0x1], 0  ;;  %s1223_s13 = smov 0   ;;  %s1225_s14 = smov 0  }
   0x4   :  { %s1227_s15 = smov 0   ;;  %s1229_s16 = smov 0  }
   0x5 LB: > { %1621 = sst [smem:[#allocation8_spill]] %s1153_s15  ;;  %s1244_s17 = sadd.s32 4294967295, %s1157_s16   ;;  %s1157_s16 = sphi %s1229_s16, %s1632_s16   ;;  %s1153_s15 = sphi %s1227_s15, %s1634_s15   ;;  %s1149_s14 = sphi %s1225_s14, %s1636_s14   ;;  %s1145_s13 = sphi %s1223_s13, %s1635_s13  }
   0x6   : > { %s970_s18 = sadd.s32 4294967294, %s1157_s16   ;;  %s1248_s19 = sadd.s32 1, %s1157_s16  }
   0x7   : > { %1622 = sst [smem:[#allocation9_spill]] %s1248_s19  ;;  %s33_s20 = sadd.s32 1, %s1153_s15 }
   0x8   : > { %s30_s21 = ssub.s32 %s1157_s16, %s1248_s19  ;;  %p40_p0 = scmp.ne.s32.totalorder %s1153_s15, %s1149_s14 }
   0x9   : > { %p31_p1 = scmp.eq.s32.totalorder %s30_s21, 0  ;;  %p41_p2 = scmp.eq.s32.totalorder %s1157_s16, 0 }
   0xa   : > { %p46_p3 = scmp.ne.s32.totalorder %s1149_s14, %s1145_s13  ;;  %p47_p4 = scmp.eq.s32.totalorder %s1244_s17, 0 }
   0xb   : > { %s1260_s22 = scalar_select %p31_p1, %s1153_s15, %s33_s20  }
   0xc   : > { %p1262_p5 = por %p41_p2, %p40_p0  ;;  %p1266_p6 = por %p47_p4, %p46_p3 }
   0xd   : > { %1623 = sst [smem:[#allocation10_spill]] %s1260_s22  ;;  %p259_p7 = scmp.eq.s32.totalorder %s1244_s17, 1 }
   0xe   : > { %p265_p8 = scmp.eq.s32.totalorder %s970_s18, 1  ;;  %p1016_p10 = scmp.lt.s32.totalorder %s1157_s16, 2 }
   0xf   : > { %p1273_p11 = por %p259_p7, %p40_p0  ;;  %s312_s27 = sand.u32 1, %s1153_s15  }
  0x10   : > { %p1277_p12 = por %p265_p8, %p46_p3  ;;  %s1001_s28 = sshll.u32 %s1157_s16, 4 }
  0x11   : > { %s973_s29 = sshll.u32 %s312_s27, 4  ;;  %s321_s12 = scalar_lea.hbm %s1606_s0, %s1001_s28 }
  0x12   : > { %s1627_s26 = scalar_select %p1277_p12, 1, 0 }
  0x13   : > { %s323_s20 = sshll.u32 %s321_s12, 4  ;;  %s316_s18 = scalar_lea.vmem [#allocation2], %s973_s29  ;;  %s324_s20 = int_to_ptr.hbm [resolvable:$true] %s323_s20 }
  0x14   : > { %1628 = sst [smem:[#allocation11_spill]] %s1627_s26  ;;  %s325_s21 = sshll.u32 %s316_s18, 4  ;;  %s326_s21 = int_to_ptr.vmem [resolvable:$true] %s325_s21 }
  0x15   : > { %p1288_p13 = pnand %p1016_p10, %p1262_p5  ;;  %p976_p0 = scmp.ge.s32.totalorder %s1157_s16, 1 }
  0x16   : > { %p330_p1 = scmp.lt.s32.totalorder %s1157_s16, 3  ;;  %s313_s15 = scalar_lea.sflag [#allocation3], %s312_s27 }
  0x17   : > { %s1061_s19 = sshra.s32 %s324_s20, 4  ;;  %p1065_p3 = pneg %p1288_p13  ;;  %s1062_s19 = int_to_ptr.hbm [resolvable:$true] %s1061_s19 }
  0x18   : > { %s1063_s26 = scalar_lea.hbm %s1062_s19, 16  ;;  %s1068_s23 = scalar_lea.hbm %s1606_s0, 32 }
  0x19   : > { %p1064_p2 = scmp.ne.s32.totalorder %s1062_s19, %s1063_s26  ;;  %p1069_p5 = scmp.lt.s32.totalorder %s1062_s19, %s1606_s0 }
  0x1a   : > { %p1070_p8 = scmp.lt.s32.totalorder %s1068_s23, %s1063_s26 }
  0x1b   : > { %p1066_p4 = pnand %p1065_p3, %p1064_p2 }
  0x1c   : > { %p1071_p10 = por %p1070_p8, %p1069_p5 }
  0x1d   : > { %p1067_p7 = pneg %p1066_p4 }
  0x1f   : > { %p1072_p9 = pnand %p1071_p10, %p1067_p7 }
  0x21   : > { %1075 = shalt.err (!%p1072_p9)
}
  0x22   : > { %1011 = dma.hbm_to_vmem [thread:$0]  (!%p1288_p13), %s324_s20, 256, %s326_s21, %s313_s15  }
  0x23   : > { %p331_p2 = pnand %p976_p0, %p330_p1 }
  0x24   : > { %s1309_s27 = sand.u32 (!%p331_p2), 1, %s1149_s14  }
  0x25   : > { %334 = sbr.rel (%p331_p2) target bundleno = 789 (0x315), region = 60  ;;  %s977_s19 = sshll.u32 (!%p331_p2), %s1309_s27, 4 }
  0x26   : > { %s337_s26 = scalar_lea.sflag (!%p331_p2), [#allocation3], %s1309_s27  ;;  %s340_s12 = scalar_lea.vmem (!%p331_p2), [#allocation2], %s977_s19 }
  0x2a   : > { %1136 = dma.done.wait (%p1266_p6), %s337_s26, 256  }
  0x2b   : > { %1138 = vsyncadd (%p1266_p6), %s337_s26, 4294967040  ;;  %v1159_v0 = vmov 0   ;;  %v381_v1 = vld [vmem:[%s1608_s2] sm:$0xff]  ;;  %v404_v4 = vld [vmem:[%s1611_s5 + $0x8] sm:$0xff]  ;;  %vm424_vm0 = vcmask 1043456   ;;  %vm420_vm1 = vcmask 64512   ;;  %v471_v45 = vlaneseq }
  0x2c   : > { %1059 = vset.pattern.permute.xlu0 %v1159_v0  ;;  %1060 = vset.pattern.permute.xlu1 %v1159_v0  ;;  %v389_v2 = vld [vmem:[%s1609_s3] sm:$0xff]  ;;  %v1331_v6 = vld [vmem:[%s340_s12] sm:$0xff]  ;;  %s1160_s11 = smov 113   ;;  %s1161_s26 = smov 112   ;;  %vm776_vm10 = vcmask 130048   ;;  %vm846_vm11 = vcmask 1041408  }
  0x2d   : > { %384 = vperm.xlu0 %1059, %v381_v1   ;;  %v403_v3 = vld [vmem:[%s1611_s5] sm:$0xff]  ;;  %s1163_s15 = smov 127   ;;  %s1164_s22 = smov 15   ;;  %v1418_v49 = vand.u32 127, %v471_v45  ;;  %vm842_vm12 = vcmask 31744  }
  0x2e   : > { %407 = vperm.xlu1 %1060, %v403_v3   ;;  %v1333_v7 = vld [vmem:[%s340_s12 + $0x8] sm:$0xff]  ;;  %s1162_s12 = smov 1   ;;  %s1165_s20 = smov 17  }
  0x2f   : > { %v1002_v19 = vld [vmem:[%s1610_s4] sm:$0xff]  ;;  %s1166_s18 = smov 16   ;;  %s1167_s21 = smov 111   ;;  %vm630_vm2 = vcmp.lt.s32.totalorder %v1418_v49, 112  ;;  %vm604_vm3 = vcmp.lt.s32.totalorder %v1418_v49, 113  ;;  %vm578_vm4 = vcmp.lt.s32.totalorder %v1418_v49, 127 }
  0x30   : > { %v836_v34 = vld [vmem:[%s1615_s9] sm:$0xff]  ;;  %vm524_vm5 = vcmp.lt.s32.totalorder %v1418_v49, 15  ;;  %vm550_vm6 = vcmp.lt.s32.totalorder %v1418_v49, 1  ;;  %vm498_vm7 = vcmp.lt.s32.totalorder %v1418_v49, 16  ;;  %vm473_vm8 = vcmp.lt.s32.totalorder %v1418_v49, 17 }
  0x31   : > { %v765_v35 = vld [vmem:[%s1613_s7] sm:$0xf]  ;;  %v990_v50 = vld [vmem:[%s1607_s1 + $0x6] ss:$8 sm:$0x3]  ;;  %vm656_vm9 = vcmp.lt.s32.totalorder %v1418_v49, 111 }
  0x32   : > { %v638_v54 = vperm.slane %v990_v50, 0  ;;  %v639_v55 = vperm.slane %v990_v50, 1  ;;  %v989_v58 = vld [vmem:[%s1607_s1 + $0x5] ss:$8 sm:$0x3] }
  0x33   : > { %v612_v61 = vperm.slane %v989_v58, 0  ;;  %v613_v0 = vperm.slane %v989_v58, 1 }
  0x35   : > { %392 = vperm.xlu0 %1059, %v389_v2  }
  0x36   : > { %412 = vperm.xlu1 %1060, %v404_v4  }
  0x9f   : > { %v385_v5 = vpop.permute.xlu0 %384 }
  0xa0   : > { %v387_v8 = vmul.f32 %v385_v5, %v1331_v6  ;;  %v388_v9 = vmul.f32 %v385_v5, %v1333_v7  ;;  %v408_v20 = vpop.permute.xlu1 %407 }
  0xa7   : > { %v393_v10 = vpop.permute.xlu0 %392 }
  0xa8   : > { %v395_v11 = vadd.f32 %v393_v10, %v387_v8  ;;  %v396_v12 = vadd.f32 %v393_v10, %v388_v9  ;;  %v413_v28 = vpop.permute.xlu1 %412 }
  0xaa   : > { %v397_v13 = vmax.f32 %v395_v11, 0.0  ;;  %v398_v14 = vmax.f32 %v396_v12, 0.0 }
  0xac   : > { %v401_v15 = vpack.c.bf16 %v397_v13, %v397_v13  ;;  %v402_v16 = vpack.c.bf16 %v398_v14, %v398_v14  ;;  %v988_v14 = vld [vmem:[%s1607_s1 + $0x4] ss:$8 sm:$0x3] }
  0xae   : > { %v426_v17 = vsel %vm424_vm0, %v401_v15, 0  ;;  %v429_v18 = vsel %vm424_vm0, %v402_v16, 0 }
  0xaf   : > { %438 = vmatpush.bf16.msra.mxu0 %v426_v17  ;;  %452 = vmatpush.bf16.msra.mxu1 %v429_v18 }
  0xb2   : > { %983 = vmatmul.msk.bf16.vlgmr.msra.gmra.mxu0 %vm420_vm1, %v1002_v19  ;;  %984 = vmatmul.msk.bf16.vlgmr.msra.gmra.mxu1 %vm420_vm1, %v1002_v19 }
 0x12f   : > { %v440_v21 = vpop.f32.mrf.mxu0  ;;  %v454_v22 = vpop.f32.mrf.mxu1 }
 0x130   : > { %v441_v23 = vadd.f32 %v440_v21, %v408_v20  ;;  %v455_v24 = vadd.f32 %v454_v22, %v408_v20  ;;  %v586_v21 = vperm.slane %v988_v14, 0  ;;  %v587_v22 = vperm.slane %v988_v14, 1 }
 0x132   : > { %v1340_v25 = vmax.f32 %v441_v23, 0.0  ;;  %v1342_v26 = vmax.f32 %v455_v24, 0.0 }
 0x134   : > { %600 = vrot.lane.b32.xlu1 %v1342_v26, %s1160_s11  ;;  %626 = vrot.lane.b32.xlu0 %v1342_v26, %s1161_s26  ;;  %v1452_v19 = vpack.c.bf16 %v1342_v26, %v1340_v25 }
 0x135   : > { %622 = vrot.lane.b32.xlu2 %v1340_v25, %s1161_s26 }
 0x136   : > { %v717_v45 = vunpack.c.h.b16 %v1452_v19 }
 0x137   : > { %v456_v27 = vpop.f32.mrf.mxu1  ;;  %v442_v31 = vpop.f32.mrf.mxu0 }
 0x138   : > { %v457_v29 = vadd.f32 %v456_v27, %v413_v28  ;;  %v443_v32 = vadd.f32 %v442_v31, %v413_v28 }
 0x13a   : > { %v1365_v30 = vmax.f32 %v457_v29, 0.0  ;;  %v1372_v33 = vmax.f32 %v443_v32, 0.0  ;;  %v764_v32 = vld [vmem:[%s1612_s6] sm:$0xf] }
 0x13b   : > { %772 = vst [vmem:[#allocation1] ss:$4 sm:$0xff] %v764_v32 }
 0x13c   : > { %542 = vrot.lane.b32.xlu1 %v1340_v25, %s1162_s12  ;;  %570 = vrot.lane.b32.xlu0 %v1340_v25, %s1163_s15  ;;  %v1456_v20 = vpack.c.bf16 %v1365_v30, %v1372_v33 }
 0x13d   : > { %596 = vrot.lane.b32.xlu2 %v1340_v25, %s1160_s11 }
 0x13e   : > { %v719_v50 = vunpack.c.h.b16 %v1456_v20 }
 0x144   : > { %520 = vrot.lane.b32.xlu1 %v1342_v26, %s1164_s22  ;;  %546 = vrot.lane.b32.xlu0 %v1342_v26, %s1162_s12 }
 0x145   : > { %574 = vrot.lane.b32.xlu2 %v1342_v26, %s1163_s15 }
 0x14c   : > { %463 = vrot.lane.b32.xlu1 %v1340_v25, %s1165_s20  ;;  %490 = vrot.lane.b32.xlu0 %v1340_v25, %s1166_s18 }
 0x14d   : > { %516 = vrot.lane.b32.xlu2 %v1340_v25, %s1164_s22 }
 0x154   : > { %628 = vrot.lane.b32.xlu1 %v1365_v30, %s1161_s26  ;;  %467 = vrot.lane.b32.xlu0 %v1342_v26, %s1165_s20 }
 0x155   : > { %494 = vrot.lane.b32.xlu2 %v1342_v26, %s1166_s18 }
 0x15c   : > { %572 = vrot.lane.b32.xlu1 %v1372_v33, %s1163_s15  ;;  %598 = vrot.lane.b32.xlu0 %v1372_v33, %s1160_s11 }
 0x15d   : > { %648 = vrot.lane.b32.xlu2 %v1340_v25, %s1167_s21 }
 0x164   : > { %548 = vrot.lane.b32.xlu1 %v1365_v30, %s1162_s12  ;;  %576 = vrot.lane.b32.xlu0 %v1365_v30, %s1163_s15  ;;  %s1111_s15 = scalar_lea.hbm %s1616_s10, 32 }
 0x165   : > { %624 = vrot.lane.b32.xlu2 %v1372_v33, %s1161_s26 }
 0x16c   : > { %492 = vrot.lane.b32.xlu1 %v1372_v33, %s1166_s18  ;;  %518 = vrot.lane.b32.xlu0 %v1372_v33, %s1164_s22 }
 0x16d   : > { %602 = vrot.lane.b32.xlu2 %v1365_v30, %s1160_s11  ;;  %s884_s11 = scalar_lea.sflag [#allocation4], %s1309_s27 }
 0x174   : > { %469 = vrot.lane.b32.xlu1 %v1365_v30, %s1165_s20  ;;  %496 = vrot.lane.b32.xlu0 %v1365_v30, %s1166_s18  ;;  %s377_s18 = scalar_lea.vmem [#allocation5], %s977_s19 }
 0x175   : > { %544 = vrot.lane.b32.xlu2 %v1372_v33, %s1162_s12  ;;  %s897_s23 = sshll.u32 %s377_s18, 4  ;;  %s898_s23 = int_to_ptr.vmem [resolvable:$true] %s897_s23 }
 0x17c   : > { %652 = vrot.lane.b32.xlu1 %v1342_v26, %s1167_s21  ;;  %650 = vrot.lane.b32.xlu0 %v1372_v33, %s1167_s21 }
 0x17d   : > { %522 = vrot.lane.b32.xlu2 %v1365_v30, %s1164_s22 }
 0x184   : > { %839 = vperm.xlu1 %1060, %v836_v34   ;;  %768 = vperm.xlu0 %1059, %v765_v35  }
 0x185   : > { %465 = vrot.lane.b32.xlu2 %v1372_v33, %s1165_s20 }
 0x18d   : > { %654 = vrot.lane.b32.xlu2 %v1365_v30, %s1167_s21  ;;  %s1003_s21 = sshll.u32 %s1244_s17, 4 }
 0x18e   : > { %s895_s29 = scalar_lea.hbm %s1616_s10, %s1003_s21 }
 0x18f   : > { %v623_v36 = vpop.permute.xlu2 %622  ;;  %s899_s30 = sshll.u32 %s895_s29, 4  ;;  %s900_s30 = int_to_ptr.hbm [resolvable:$true] %s899_s30 }
 0x190   : > { %s1105_s26 = sshra.s32 %s900_s30, 4  ;;  %s1106_s26 = int_to_ptr.hbm [resolvable:$true] %s1105_s26 }
 0x191   : > { %s1107_s19 = scalar_lea.hbm %s1106_s26, 16  ;;  %p1112_p0 = scmp.lt.s32.totalorder %s1106_s26, %s1616_s10 }
 0x192   : > { %p1108_p6 = scmp.ne.s32.totalorder %s1106_s26, %s1107_s19  ;;  %p1113_p1 = scmp.lt.s32.totalorder %s1111_s15, %s1107_s19 }
 0x194   : > { %p1109_p9 = pnand %p1108_p6, %p1273_p11  ;;  %p1114_p3 = por %p1113_p1, %p1112_p0 }
 0x196   : > { %p1110_p13 = pneg %p1109_p9 }
 0x197   : > { %v597_v37 = vpop.permute.xlu2 %596 }
 0x198   : > { %p1115_p4 = pnand %p1114_p3, %p1110_p13 }
 0x19f   : > { %v575_v38 = vpop.permute.xlu2 %574 }
 0x1a6   : > { %v601_v39 = vpop.permute.xlu1 %600  ;;  %v627_v40 = vpop.permute.xlu0 %626 }
 0x1a7   : > { %v1406_v41 = vpop.permute.xlu2 %516  ;;  %v631_v56 = vsel %vm630_vm2, %v623_v36, %v627_v40  ;;  %v633_v57 = vsel %vm630_vm2, %v627_v40, %v623_v36  ;;  %v605_v1 = vsel %vm604_vm3, %v597_v37, %v601_v39  ;;  %v607_v5 = vsel %vm604_vm3, %v601_v39, %v597_v37  ;;  %v1473_v39 = vld [vmem:[%s1607_s1 + $0x2] ss:$8 sm:$0x3] }
 0x1a8   : > { %v642_v59 = vmul.f32 %v638_v54, %v631_v56  ;;  %v643_v60 = vmul.f32 %v639_v55, %v633_v57  ;;  %v616_v12 = vmul.f32 %v612_v61, %v605_v1  ;;  %v617_v13 = vmul.f32 %v613_v0, %v607_v5 }
 0x1a9   : > { %v718_v36 = vunpack.c.l.b16 %v1456_v20  ;;  %v532_v57 = vperm.slane %v1473_v39, 0  ;;  %v533_v58 = vperm.slane %v1473_v39, 1  ;;  %v721_v39 = vpack.c.b16 %v719_v50, %v717_v45 }
 0x1aa   : > { %v646_v10 = vpack.c.bf16 %v643_v60, %v642_v59  ;;  %v620_v33 = vpack.c.bf16 %v617_v13, %v616_v12  ;;  %v987_v59 = vld [vmem:[%s1607_s1 + $0x3] ss:$8 sm:$0x3] }
 0x1ac   : > { %v746_v15 = vunpack.c.l.b16 %v646_v10  ;;  %v747_v17 = vunpack.c.h.b16 %v646_v10  ;;  %v559_v10 = vperm.slane %v987_v59, 1 }
 0x1ae   : > { %v1408_v42 = vpop.permute.xlu1 %542  ;;  %v571_v43 = vpop.permute.xlu0 %570 }
 0x1af   : > { %v1410_v44 = vpop.permute.xlu2 %494  ;;  %v579_v29 = vsel %vm578_vm4, %v571_v43, %v575_v38  ;;  %v581_v31 = vsel %vm578_vm4, %v575_v38, %v571_v43  ;;  %v716_v43 = vunpack.c.l.b16 %v1452_v19 }
 0x1b0   : > { %v590_v37 = vmul.f32 %v586_v21, %v579_v29  ;;  %v591_v38 = vmul.f32 %v587_v22, %v581_v31 }
 0x1b1   : > { %v1484_v60 = vpack.c.b16 %v718_v36, %v716_v43 }
 0x1b6   : > { %v1412_v46 = vpop.permute.xlu1 %520  ;;  %v1414_v47 = vpop.permute.xlu0 %546 }
 0x1b7   : > { %v1416_v48 = vpop.permute.xlu2 %648  ;;  %v525_v14 = vsel %vm524_vm5, %v1406_v41, %v1412_v46 }
 0x1be   : > { %v1424_v51 = vpop.permute.xlu1 %463  ;;  %v1426_v52 = vpop.permute.xlu0 %490 }
 0x1bf   : > { %v625_v53 = vpop.permute.xlu2 %624 }
 0x1c6   : > { %v629_v62 = vpop.permute.xlu1 %628  ;;  %v1436_v63 = vpop.permute.xlu0 %467 }
 0x1c7   : > { %v632_v2 = vsel %vm630_vm2, %v625_v53, %v629_v62  ;;  %v634_v3 = vsel %vm630_vm2, %v629_v62, %v625_v53  ;;  %v603_v4 = vpop.permute.xlu2 %602  ;;  %v736_v53 = vunpack.c.l.b16 %v620_v33 }
 0x1c8   : > { %v644_v8 = vmul.f32 %v638_v54, %v632_v2  ;;  %v645_v9 = vmul.f32 %v639_v55, %v634_v3  ;;  %v737_v55 = vunpack.c.h.b16 %v620_v33 }
 0x1ca   : > { %v647_v11 = vpack.c.bf16 %v645_v9, %v644_v8  ;;  %v558_v9 = vperm.slane %v987_v59, 0  ;;  %v476_v59 = vsel %vm473_vm8, %v1436_v63, %v1424_v51 }
 0x1cc   : > { %v748_v16 = vunpack.c.l.b16 %v647_v11  ;;  %v749_v18 = vunpack.c.h.b16 %v647_v11  ;;  %v1498_v11 = vld [vmem:[%s1607_s1 + $0x1] ss:$8 sm:$0x3] }
 0x1ce   : > { %v573_v23 = vpop.permute.xlu1 %572  ;;  %v599_v24 = vpop.permute.xlu0 %598  ;;  %v750_v27 = vpack.c.b16 %v748_v16, %v746_v15  ;;  %v751_v28 = vpack.c.b16 %v749_v18, %v747_v17  ;;  %v551_v15 = vsel %vm550_vm6, %v1408_v42, %v1414_v47  ;;  %v553_v16 = vsel %vm550_vm6, %v1414_v47, %v1408_v42  ;;  %v478_v47 = vld [vmem:[%s1607_s1] ss:$8 sm:$0x3] }
 0x1cf   : > { %v606_v25 = vsel %vm604_vm3, %v599_v24, %v603_v4  ;;  %v608_v26 = vsel %vm604_vm3, %v603_v4, %v599_v24  ;;  %v545_v30 = vpop.permute.xlu2 %544  ;;  %v527_v18 = vsel %vm524_vm5, %v1412_v46, %v1406_v41  ;;  %v563_v42 = vmul.f32 %v559_v10, %v551_v15 }
 0x1d0   : > { %v618_v34 = vmul.f32 %v612_v61, %v606_v25  ;;  %v619_v35 = vmul.f32 %v613_v0, %v608_v26  ;;  %779 = vmatpush.bf16.msra.mxu2 %v750_v27  ;;  %805 = vmatpush.bf16.msrb.mxu0 %v751_v28  ;;  %v594_v61 = vpack.c.bf16 %v591_v38, %v590_v37  ;;  %v480_v36 = vperm.slane %v478_v47, 0 }
 0x1d1   : > { %v562_v28 = vmul.f32 %v558_v9, %v553_v16  ;;  %v536_v25 = vmul.f32 %v532_v57, %v527_v18  ;;  %v537_v26 = vmul.f32 %v533_v58, %v525_v14  ;;  %v499_v41 = vsel %vm498_vm7, %v1426_v52, %v1410_v44 }
 0x1d2   : > { %v621_v40 = vpack.c.bf16 %v619_v35, %v618_v34  ;;  %v726_v24 = vunpack.c.l.b16 %v594_v61  ;;  %v727_v27 = vunpack.c.h.b16 %v594_v61  ;;  %v501_v46 = vsel %vm498_vm7, %v1410_v44, %v1426_v52 }
 0x1d3   : > { %v481_v43 = vperm.slane %v478_v47, 1  ;;  %v540_v44 = vpack.c.bf16 %v537_v26, %v536_v25 }
 0x1d4   : > { %v738_v54 = vunpack.c.l.b16 %v621_v40  ;;  %v739_v56 = vunpack.c.h.b16 %v621_v40  ;;  %v566_v40 = vpack.c.bf16 %v563_v42, %v562_v28 }
 0x1d5   : > { %v697_v18 = vunpack.c.h.b16 %v540_v44 }
 0x1d6   : > { %v549_v62 = vpop.permute.xlu1 %548  ;;  %v577_v0 = vpop.permute.xlu0 %576  ;;  %v740_v1 = vpack.c.b16 %v738_v54, %v736_v53  ;;  %v741_v2 = vpack.c.b16 %v739_v56, %v737_v55  ;;  %v474_v56 = vsel %vm473_vm8, %v1424_v51, %v1436_v63 }
 0x1d7   : > { %v552_v3 = vsel %vm550_vm6, %v545_v30, %v549_v62  ;;  %v554_v4 = vsel %vm550_vm6, %v549_v62, %v545_v30  ;;  %v580_v5 = vsel %vm578_vm4, %v573_v23, %v577_v0  ;;  %v582_v8 = vsel %vm578_vm4, %v577_v0, %v573_v23  ;;  %v523_v17 = vpop.permute.xlu2 %522 }
 0x1d8   : > { %v592_v12 = vmul.f32 %v586_v21, %v580_v5  ;;  %v593_v13 = vmul.f32 %v587_v22, %v582_v8  ;;  %780 = vmatpush.bf16.msra.mxu2 %v740_v1  ;;  %806 = vmatpush.bf16.msrb.mxu0 %v741_v2  ;;  %v564_v19 = vmul.f32 %v558_v9, %v554_v4  ;;  %v506_v22 = vperm.slane %v1498_v11, 0 }
 0x1d9   : > { %v565_v20 = vmul.f32 %v559_v10, %v552_v3  ;;  %v507_v23 = vperm.slane %v1498_v11, 1  ;;  %v707_v62 = vunpack.c.h.b16 %v566_v40  ;;  %v484_v1 = vmul.f32 %v480_v36, %v476_v59 }
 0x1da   : > { %v595_v21 = vpack.c.bf16 %v593_v13, %v592_v12  ;;  %v510_v52 = vmul.f32 %v506_v22, %v501_v46  ;;  %v485_v2 = vmul.f32 %v481_v43, %v474_v56  ;;  %v696_v3 = vunpack.c.l.b16 %v540_v44  ;;  %v773_v56 = vld.sshfl [vmem:[#allocation1] sm:$0xff pattern:$0x73625140] }
 0x1db   : > { %v567_v30 = vpack.c.bf16 %v565_v20, %v564_v19  ;;  %v511_v55 = vmul.f32 %v507_v23, %v499_v41  ;;  %v991_v19 = vld [vmem:[%s1607_s1 + $0x7] ss:$8 sm:$0x3] }
 0x1dc   : > { %v728_v29 = vunpack.c.l.b16 %v595_v21  ;;  %v729_v31 = vunpack.c.h.b16 %v595_v21  ;;  %v664_v47 = vperm.slane %v991_v19, 0 }
 0x1dd   : > { %v708_v50 = vunpack.c.l.b16 %v567_v30  ;;  %v709_v61 = vunpack.c.h.b16 %v567_v30  ;;  %v514_v0 = vpack.c.bf16 %v511_v55, %v510_v52 }
 0x1de   : > { %v493_v32 = vpop.permute.xlu1 %492  ;;  %v519_v33 = vpop.permute.xlu0 %518  ;;  %v730_v34 = vpack.c.b16 %v728_v29, %v726_v24  ;;  %v731_v35 = vpack.c.b16 %v729_v31, %v727_v27 }
 0x1df   : > { %v526_v37 = vsel %vm524_vm5, %v519_v33, %v523_v17  ;;  %v528_v38 = vsel %vm524_vm5, %v523_v17, %v519_v33  ;;  %v711_v9 = vpack.c.b16 %v709_v61, %v707_v62  ;;  %v488_v17 = vpack.c.bf16 %v485_v2, %v484_v1 }
 0x1e0   : > { %v538_v53 = vmul.f32 %v532_v57, %v528_v38  ;;  %v539_v54 = vmul.f32 %v533_v58, %v526_v37  ;;  %781 = vmatpush.bf16.msra.mxu2 %v730_v34  ;;  %807 = vmatpush.bf16.msrb.mxu0 %v731_v35  ;;  %v466_v57 = vpop.permute.xlu2 %465  ;;  %v706_v58 = vunpack.c.l.b16 %v566_v40  ;;  %v686_v28 = vunpack.c.l.b16 %v514_v0 }
 0x1e1   : > { %v687_v42 = vunpack.c.h.b16 %v514_v0  ;;  %v676_v25 = vunpack.c.l.b16 %v488_v17 }
 0x1e2   : > { %v541_v45 = vpack.c.bf16 %v539_v54, %v538_v53  ;;  %v710_v8 = vpack.c.b16 %v708_v50, %v706_v58  ;;  %v677_v53 = vunpack.c.h.b16 %v488_v17 }
 0x1e4   : > { %782 = vmatpush.bf16.msra.mxu2 %v1484_v60  ;;  %808 = vmatpush.bf16.msrb.mxu0 %v721_v39  ;;  %v698_v10 = vunpack.c.l.b16 %v541_v45  ;;  %v699_v11 = vunpack.c.h.b16 %v541_v45 }
 0x1e6   : > { %v470_v4 = vpop.permute.xlu1 %469  ;;  %v497_v5 = vpop.permute.xlu0 %496  ;;  %v700_v24 = vpack.c.b16 %v698_v10, %v696_v3  ;;  %v701_v27 = vpack.c.b16 %v699_v11, %v697_v18 }
 0x1e7   : > { %v475_v51 = vsel %vm473_vm8, %v466_v57, %v470_v4  ;;  %v477_v63 = vsel %vm473_vm8, %v470_v4, %v466_v57  ;;  %v500_v60 = vsel %vm498_vm7, %v493_v32, %v497_v5  ;;  %v502_v12 = vsel %vm498_vm7, %v497_v5, %v493_v32  ;;  %v774_v57 = vld.sshfl [vmem:[#allocation1 + $0x8] sm:$0xff pattern:$0x73625140] }
 0x1e8   : > { %v486_v13 = vmul.f32 %v480_v36, %v477_v63  ;;  %v487_v14 = vmul.f32 %v481_v43, %v475_v51  ;;  %v512_v15 = vmul.f32 %v506_v22, %v502_v12  ;;  %v513_v16 = vmul.f32 %v507_v23, %v500_v60  ;;  %783 = vmatpush.bf16.msra.mxu2 %v710_v8  ;;  %v655_v31 = vpop.permute.xlu2 %654  ;;  %v833_v60 = vld [vmem:[%s1614_s8] sm:$0xf] }
 0x1e9   : > { %809 = vmatpush.bf16.msrb.mxu0 %v711_v9  ;;  %v665_v22 = vperm.slane %v991_v19, 1 }
 0x1ea   : > { %v489_v20 = vpack.c.bf16 %v487_v14, %v486_v13  ;;  %v515_v21 = vpack.c.bf16 %v513_v16, %v512_v15 }
 0x1ec   : > { %784 = vmatpush.bf16.msra.mxu2 %v700_v24  ;;  %v688_v23 = vunpack.c.l.b16 %v515_v21  ;;  %v689_v29 = vunpack.c.h.b16 %v515_v21  ;;  %v678_v32 = vunpack.c.l.b16 %v489_v20  ;;  %v679_v33 = vunpack.c.h.b16 %v489_v20 }
 0x1ed   : > { %810 = vmatpush.bf16.msrb.mxu0 %v701_v27 }
 0x1ee   : > { %v653_v26 = vpop.permute.xlu1 %652  ;;  %v651_v41 = vpop.permute.xlu0 %650  ;;  %v690_v46 = vpack.c.b16 %v688_v23, %v686_v28  ;;  %v691_v30 = vpack.c.b16 %v689_v29, %v687_v42  ;;  %v680_v54 = vpack.c.b16 %v678_v32, %v676_v25  ;;  %v681_v55 = vpack.c.b16 %v679_v33, %v677_v53 }
 0x1ef   : > { %v657_v34 = vsel %vm656_vm9, %v1416_v48, %v653_v26  ;;  %v659_v35 = vsel %vm656_vm9, %v653_v26, %v1416_v48  ;;  %v658_v36 = vsel %vm656_vm9, %v651_v41, %v655_v31  ;;  %v660_v37 = vsel %vm656_vm9, %v655_v31, %v651_v41 }
 0x1f0   : > { %v668_v38 = vmul.f32 %v664_v47, %v657_v34  ;;  %v669_v39 = vmul.f32 %v665_v22, %v659_v35  ;;  %v670_v40 = vmul.f32 %v664_v47, %v658_v36  ;;  %v671_v43 = vmul.f32 %v665_v22, %v660_v37  ;;  %785 = vmatpush.bf16.msra.mxu2 %v690_v46 }
 0x1f1   : > { %811 = vmatpush.bf16.msrb.mxu0 %v691_v30 }
 0x1f2   : > { %v672_v44 = vpack.c.bf16 %v669_v39, %v668_v38  ;;  %v673_v52 = vpack.c.bf16 %v671_v43, %v670_v40 }
 0x1f4   : > { %786 = vmatpush.bf16.msra.mxu2 %v680_v54  ;;  %v756_v48 = vunpack.c.l.b16 %v672_v44  ;;  %v758_v59 = vunpack.c.l.b16 %v673_v52  ;;  %v757_v45 = vunpack.c.h.b16 %v672_v44  ;;  %v759_v50 = vunpack.c.h.b16 %v673_v52 }
 0x1f5   : > { %812 = vmatpush.bf16.msrb.mxu0 %v681_v55 }
 0x1f6   : > { %v760_v49 = vpack.c.b16 %v758_v59, %v756_v48  ;;  %v761_v61 = vpack.c.b16 %v759_v50, %v757_v45  ;;  %v769_v62 = vpop.permute.xlu0 %768  ;;  %v840_v17 = vpop.permute.xlu1 %839 }
 0x1f7   : > { %787 = vmatmul.bf16.vlgmr.msra.gmra.mxu2 %v773_v56 }
 0x1f8   : > { %813 = vmatmul.bf16.vlgmr.msrb.gmra.mxu0 %v773_v56  ;;  %799 = vmatpush.bf16.msra.mxu3 %v760_v49 }
 0x1f9   : > { %825 = vmatpush.bf16.msrb.mxu1 %v761_v61 }
 0x1fb   : > { %992 = vmatmul.msk.bf16.vlgmr.msra.gmra.mxu3 %vm776_vm10, %v774_v57 }
 0x1fc   : > { %993 = vmatmul.msk.bf16.vlgmr.msrb.gmra.mxu1 %vm776_vm10, %v774_v57 }
 0x275   : > { %v814_v58 = vpop.f32.mrf.mxu0 }
 0x276   : > { %v815_v0 = vadd.f32 %v814_v58, %v769_v62 }
 0x279   : > { %v827_v1 = vpop.f32.mrf.mxu1 }
 0x27a   : > { %v828_v2 = vadd.f32 %v827_v1, %v815_v0  ;;  %v788_v3 = vpop.f32.mrf.mxu2 }
 0x27b   : > { %v789_v5 = vadd.f32 %v788_v3, %v769_v62 }
 0x27c   : > { %v832_v4 = vmax.f32 %v828_v2, 0.0 }
 0x27d   : > { %v816_v8 = vpop.f32.mrf.mxu0 }
 0x27e   : > { %v835_v9 = vpack.c.bf16 %v832_v4, %v832_v4  ;;  %v801_v10 = vpop.f32.mrf.mxu3 }
 0x27f   : > { %v802_v11 = vadd.f32 %v801_v10, %v789_v5 }
 0x280   : > { %v851_v51 = vsel %vm846_vm11, %v835_v9, 0 }
 0x281   : > { %v831_v63 = vmax.f32 %v802_v11, 0.0  ;;  %873 = vmatpush.bf16.msra.mxu1 %v851_v51  ;;  %v829_v12 = vpop.f32.mrf.mxu1 }
 0x282   : > { %v790_v13 = vpop.f32.mrf.mxu2 }
 0x283   : > { %v834_v14 = vpack.c.bf16 %v831_v63, %v831_v63 }
 0x284   : > { %995 = vmatmul.msk.bf16.vlgmr.msra.gmra.mxu1 %vm842_vm12, %v833_v60 }
 0x285   : > { %v848_v15 = vsel %vm846_vm11, %v834_v14, 0 }
 0x286   : > { %v803_v16 = vpop.f32.mrf.mxu3  ;;  %860 = vmatpush.bf16.msrb.mxu3 %v848_v15 }
 0x289   : > { %994 = vmatmul.msk.bf16.vlgmr.msrb.gmra.mxu3 %vm842_vm12, %v833_v60 }
 0x301   : > { %v875_v18 = vpop.f32.mrf.mxu1 }
 0x302   : > { %v876_v19 = vadd.f32 %v875_v18, %v840_v17 }
 0x304   : > { %v880_v20 = vadd.f32 %v876_v19, %v1333_v7 }
 0x306   : > { %882 = vst [vmem:[%s377_s18 + $0x8] sm:$0xff] %v880_v20 }
 0x309   : > { %v877_v21 = vpop.f32.mrf.mxu1 }
 0x30c   : > { %v862_v24 = vpop.f32.mrf.mxu3 }
 0x30d   : > { %v863_v27 = vadd.f32 %v862_v24, %v840_v17 }
 0x30f   : > { %v879_v28 = vadd.f32 %v863_v27, %v1331_v6 }
 0x311   : > { %881 = vst [vmem:[%s377_s18] sm:$0xff] %v879_v28 }
 0x312   : > { %1118 = shalt.err (!%p1115_p4)
}
 0x313   : > { %1006 = dma.vmem_to_hbm [thread:$0]  (%p1273_p11), %s898_s23, 256, %s900_s30, %s884_s11  }
 0x314   : > { %v864_v6 = vpop.f32.mrf.mxu3 }
 0x315 PF: > { %s911_s18 = sand.u32 1, %s1145_s13   ;;  %p1631_p7 = scmp.ge.s32.totalorder %s1157_s16, 2 }
 0x316   : > { %s912_s21 = scalar_lea.sflag [#allocation4], %s911_s18 }
 0x317   : > { %p1013_p5 = pnand %p1631_p7, %p1277_p12 }
 0x319   : > { %p1014_p8 = pneg %p1013_p5 }
 0x31b   : > { %1140 = dma.done.wait (%p1014_p8), %s912_s21, 256  }
 0x31c   : > { %1142 = vsyncadd (%p1014_p8), %s912_s21, 4294967040  ;;  %s1632_s16 = sld [smem:[#allocation9_spill]]  ;;  %s1635_s13 = smov %s1149_s14 }
 0x31d   : > { %s1633_s28 = sld [smem:[#allocation8_spill]] }
 0x31e   : > { %s1634_s15 = sld [smem:[#allocation10_spill]] }
 0x322   : > { %p23_p10 = scmp.ge.s32.totalorder %s1632_s16, 4  }
 0x323   : > { %s1636_s14 = smov %s1633_s28 }
 0x324   :  { %25 = sbr.rel (!%p23_p10) target bundleno = 5 (0x5), region = 112 }
 0x329   :  { %918 = vsyncpa [#allocation3], 1 }
 0x32a   :  { %920 = vsyncpa [#allocation3 + $0x1], 1 }
 0x32b   :  { %921 = vsyncpa [#allocation4], 1 }
 0x32c   :  { %923 = vsyncpa [#allocation4 + $0x1], 1 }

</bundles_post_ra>
